<compile_context>
chip_gen: v7x
topology: tpu7x:2x2x1
jax: 0.10.0
libtpu: 0.0.40
codegen_flags: <defaults>
</compile_context>

<pallas_src>
import jax
import jax.numpy as jnp
from jax.experimental import pallas as pl
from jax.experimental.pallas import tpu as pltpu

# ---------------- problem sizes (small, consistent with the module) ----------
B = 2          # batch
C = 3          # image channels
H = W = 16     # image_size
F = 16         # encoder feature channels
HID = 32       # projector / predictor hidden size
PROJ = 16      # projection size

# ---------------- fused-kernel layout constants ------------------------------
DP = 128              # lane width of every feature axis
KC = 32               # conv contraction: 9*C = 27 padded to one bf16 sublane tile
R = 2 * B             # projector rows: [view1 b0, view1 b1, view2 b0, view2 b1]
SPATIAL = H * W       # pixels per image
TG_OFF = DP // 2      # lane offset of the "second" branch (flipped view / target proj)

# static row offsets of the ragged packed weight stack (all multiples of the bf16 tile 16)
O_CONV, O_PROJ1, O_PROJ2, O_PRED1, O_PRED2 = 0, 32, 64, 128, 160
W_ROWS = 192
# rows of the packed (9, DP) f32 bias/gamma/beta array
V_BC, V_PB1, V_PG, V_PBETA, V_PB2, V_QB1, V_QG, V_QBETA, V_QB2 = range(9)
N_VROWS = 9


# ---------------- the fused Pallas kernel ------------------------------------

def byol_fused_kernel(patches_ref, w_ref, v_ref, loss_ref):
    f32, bf16 = jnp.float32, jnp.bfloat16

    def wblk(off, k):                 # (k, DP) bf16 block, static tile-aligned row slice
        return w_ref[off:off + k, :]

    def vrow(i):                      # (1, DP) f32 bias / gamma / beta row
        return v_ref[i:i + 1, :]

    def bn_relu(h, gamma, beta):
        # training-mode BatchNorm1d over the 2B stacked view rows, then ReLU (f32).
        mu = jnp.mean(h, axis=0, keepdims=True)
        var = jnp.mean((h - mu) * (h - mu), axis=0, keepdims=True)
        hn = (h - mu) * jax.lax.rsqrt(var + 1e-5) * gamma + beta
        return jnp.maximum(hn, 0.0)

    # 1+2) 3x3 conv (im2col matmul) -> bias -> ReLU -> global average pool,
    #      chunked per image.  Weight lanes: 0:2F = [online|target] kernels (view 1),
    #      TG_OFF:TG_OFF+2F = W-flipped [online|target] kernels (view 2 via flip trick).
    #      Pool is an XLU sublane reduce (f32 accumulate), not a matmul.
    w_conv = wblk(O_CONV, KC)
    bias_c = vrow(V_BC)
    pooled_rows = []
    for b in range(B):                                            # static 2-way unroll
        f = jnp.dot(patches_ref[b * SPATIAL:(b + 1) * SPATIAL, :], w_conv,
                    preferred_element_type=f32)                   # (SPATIAL, DP) f32
        f = jnp.maximum(f + bias_c, 0.0)
        pooled_rows.append(jnp.sum(f, axis=0, keepdims=True) * (1.0 / SPATIAL))
    pooled4 = jnp.concatenate(pooled_rows, axis=0)                # (B, DP)

    lane_b = jax.lax.broadcasted_iota(jnp.int32, (B, DP), 1)
    view1 = jnp.where(lane_b < 2 * F, pooled4, 0.0)
    # lanes TG_OFF:TG_OFF+2F -> 0:2F (shift == DP/2, direction-independent), mask the wrap
    view2 = jnp.where(lane_b < 2 * F, pltpu.roll(pooled4, TG_OFF, axis=1), 0.0)
    pooled = jnp.concatenate([view1, view2], axis=0)              # (R, DP)

    # 3) projector MLP, online + target batched along lanes with block-diagonal weights.
    h1 = jnp.dot(pooled[:, :2 * F].astype(bf16), wblk(O_PROJ1, 2 * F),
                 preferred_element_type=f32) + vrow(V_PB1)
    a1 = bn_relu(h1, vrow(V_PG), vrow(V_PBETA))                   # (R, DP)
    # merged proj-w2: online proj -> lanes 0:PROJ, target proj -> lanes TG_OFF:TG_OFF+PROJ
    z = jnp.dot(a1[:, :2 * HID].astype(bf16), wblk(O_PROJ2, 2 * HID),
                preferred_element_type=f32) + vrow(V_PB2)         # (R, DP)

    lane_r = jax.lax.broadcasted_iota(jnp.int32, (R, DP), 1)
    z_tg = jnp.where(lane_r < PROJ, pltpu.roll(z, TG_OFF, axis=1), 0.0)
    # TODO(synk): z_tg is the EMA target branch; a future custom_vjp backward must treat it
    # (and its BN stats) as stop_gradient — forward value is identical.

    # 4) predictor MLP on the online projections (both views batched along rows).
    h2 = jnp.dot(z[:, :2 * PROJ].astype(bf16), wblk(O_PRED1, 2 * PROJ),
                 preferred_element_type=f32) + vrow(V_QB1)
    a2 = bn_relu(h2, vrow(V_QG), vrow(V_QBETA))
    p = jnp.dot(a2[:, :HID].astype(bf16), wblk(O_PRED2, HID),
                preferred_element_type=f32) + vrow(V_QB2)         # (R, DP)
    p = jnp.where(lane_r < PROJ, p, 0.0)                          # explicit dead-lane mask

    # 5) symmetric BYOL loss: 2 - 2*cos, predictions paired with the other view's targets.
    def l2n(x):
        n = jnp.sqrt(jnp.sum(x * x, axis=-1, keepdims=True))
        return x / jnp.maximum(n, 1e-12)

    p_hat = l2n(p)        # rows 0:B view-1 predictions, B:2B view-2 predictions
    t_hat = l2n(z_tg)     # rows 0:B view-1 targets,     B:2B view-2 targets
    cos12 = jnp.sum(p_hat[0:B] * t_hat[B:R], axis=-1, keepdims=True)
    cos21 = jnp.sum(p_hat[B:R] * t_hat[0:B], axis=-1, keepdims=True)
    loss_ref[0, 0] = jnp.mean((2.0 - 2.0 * cos12) + (2.0 - 2.0 * cos21))


# ---------------- host-side glue: im2col, packing, step ----------------------

def im2col_3x3(x_nhwc):
    # pad=1, stride=1 3x3 patches; feature order per (dh, dw, c).  Runs under jit and is
    # fused by XLA into 1-2 tiny ops over ~32 KiB (un-flipped images only, thanks to the
    # flip-invariance trick).
    # TODO(synk): if real PyTorch conv weights (F, C, 3, 3) are ever loaded, permute them
    # to (3, 3, C) -> flatten to match this (dh, dw, c) order.
    b, h, w_, c = x_nhwc.shape
    xp = jnp.pad(x_nhwc, ((0, 0), (1, 1), (1, 1), (0, 0)))
    cols = [xp[:, dh:dh + h, dw:dw + w_, :] for dh in range(3) for dw in range(3)]
    patches = jnp.concatenate(cols, axis=-1)                 # (b, H, W, 9*C)
    return patches.reshape(b * h * w_, 9 * c)


def init_params(key):
    ks = jax.random.split(key, 4)

    def mlp(k, din, dh, dout):
        k1, k2 = jax.random.split(k)
        return dict(
            w1=0.1 * jax.random.normal(k1, (din, dh), jnp.float32),
            b1=jnp.zeros((dh,), jnp.float32),
            g=jnp.ones((dh,), jnp.float32),
            beta=jnp.zeros((dh,), jnp.float32),
            w2=0.1 * jax.random.normal(k2, (dh, dout), jnp.float32),
            b2=jnp.zeros((dout,), jnp.float32),
        )

    online = dict(
        enc_w=0.1 * jax.random.normal(ks[0], (9 * C, F), jnp.float32),
        enc_b=jnp.zeros((F,), jnp.float32),
        proj=mlp(ks[1], F, HID, PROJ),
    )
    # target network = EMA copy, initialized identical to online (as in BYOL)
    target = jax.tree_util.tree_map(lambda a: a, online)
    pred = mlp(ks[2], PROJ, HID, PROJ)
    return online, target, pred


def pack_params(online, target, pred):
    """Pack weights into a ragged (192, 128) bf16 stack and vectors into (9, 128) f32.

    Done once at init here; in a real training loop this packing would be folded into the
    optimizer / EMA update (a handful of tiny scatters).
    """
    K9 = 9 * C
    Wp = jnp.zeros((W_ROWS, DP), jnp.float32)
    Vp = jnp.zeros((N_VROWS, DP), jnp.float32)

    def flip_conv(wk):   # reverse the dw index of a (9*C, F) kernel laid out per (dh, dw, c)
        return wk.reshape(3, 3, C, -1)[:, ::-1, :, :].reshape(K9, -1)

    # conv block: view-1 kernels at lanes 0:2F, W-flipped (view-2) kernels at TG_OFF:TG_OFF+2F
    Wp = Wp.at[O_CONV:O_CONV + K9, 0:F].set(online["enc_w"])
    Wp = Wp.at[O_CONV:O_CONV + K9, F:2 * F].set(target["enc_w"])
    Wp = Wp.at[O_CONV:O_CONV + K9, TG_OFF:TG_OFF + F].set(flip_conv(online["enc_w"]))
    Wp = Wp.at[O_CONV:O_CONV + K9, TG_OFF + F:TG_OFF + 2 * F].set(flip_conv(target["enc_w"]))
    Vp = Vp.at[V_BC, 0:F].set(online["enc_b"])
    Vp = Vp.at[V_BC, F:2 * F].set(target["enc_b"])
    Vp = Vp.at[V_BC, TG_OFF:TG_OFF + F].set(online["enc_b"])
    Vp = Vp.at[V_BC, TG_OFF + F:TG_OFF + 2 * F].set(target["enc_b"])

    # projector w1: block-diagonal over (online, target)
    Wp = Wp.at[O_PROJ1:O_PROJ1 + F, 0:HID].set(online["proj"]["w1"])
    Wp = Wp.at[O_PROJ1 + F:O_PROJ1 + 2 * F, HID:2 * HID].set(target["proj"]["w1"])
    Vp = Vp.at[V_PB1, 0:HID].set(online["proj"]["b1"])
    Vp = Vp.at[V_PB1, HID:2 * HID].set(target["proj"]["b1"])
    Vp = Vp.at[V_PG, 0:HID].set(online["proj"]["g"])
    Vp = Vp.at[V_PG, HID:2 * HID].set(target["proj"]["g"])
    Vp = Vp.at[V_PBETA, 0:HID].set(online["proj"]["beta"])
    Vp = Vp.at[V_PBETA, HID:2 * HID].set(target["proj"]["beta"])

    # merged projector w2: online proj -> lanes 0:PROJ, target proj -> TG_OFF:TG_OFF+PROJ
    Wp = Wp.at[O_PROJ2:O_PROJ2 + HID, 0:PROJ].set(online["proj"]["w2"])
    Wp = Wp.at[O_PROJ2 + HID:O_PROJ2 + 2 * HID, TG_OFF:TG_OFF + PROJ].set(target["proj"]["w2"])
    Vp = Vp.at[V_PB2, 0:PROJ].set(online["proj"]["b2"])
    Vp = Vp.at[V_PB2, TG_OFF:TG_OFF + PROJ].set(target["proj"]["b2"])

    # predictor
    Wp = Wp.at[O_PRED1:O_PRED1 + PROJ, 0:HID].set(pred["w1"])
    Vp = Vp.at[V_QB1, 0:HID].set(pred["b1"])
    Vp = Vp.at[V_QG, 0:HID].set(pred["g"])
    Vp = Vp.at[V_QBETA, 0:HID].set(pred["beta"])
    Wp = Wp.at[O_PRED2:O_PRED2 + HID, 0:PROJ].set(pred["w2"])
    Vp = Vp.at[V_QB2, 0:PROJ].set(pred["b2"])

    return dict(w=Wp.astype(jnp.bfloat16), v=Vp)


def byol_forward(packed, images_nchw):
    # TODO(synk): BYOL uses random augmentations (crop/jitter/blur); deterministic identity
    # + horizontal-flip views are used here (the flip is folded into the conv weights).
    x = jnp.transpose(images_nchw, (0, 2, 3, 1))              # NCHW -> NHWC
    patches = im2col_3x3(x)                                   # (B*H*W, 27) f32
    patches = jnp.pad(patches, ((0, 0), (0, KC - 9 * C))).astype(jnp.bfloat16)  # (512, 32)

    loss = pl.pallas_call(
        byol_fused_kernel,
        out_shape=jax.ShapeDtypeStruct((1, 1), jnp.float32),
        in_specs=[pl.BlockSpec(memory_space=pltpu.MemorySpace.VMEM)] * 3,
        out_specs=pl.BlockSpec(memory_space=pltpu.MemorySpace.SMEM),
    )(patches, packed["w"], packed["v"])
    return loss[0, 0]


byol_step_loss = jax.jit(byol_forward)

# TODO(synk): optimizer step, accelerator.backward, EMA update_moving_average, wandb logging,
# checkpointing, DataLoader and DDP/SyncBatchNorm are host-side training-loop glue with no
# Pallas equivalent; only the per-step BYOL loss forward is implemented.


if __name__ == "__main__":
    key = jax.random.PRNGKey(0)
    pkey, dkey = jax.random.split(key)
    online, target, pred = init_params(pkey)
    packed = pack_params(online, target, pred)
    images = jax.random.uniform(dkey, (B, C, H, W), jnp.float32)  # one "dataloader" batch
    loss = byol_step_loss(packed, images)
    jax.block_until_ready(loss)
    assert loss.shape == () and bool(jnp.isfinite(loss))
    print("KERNEL_OK")
</pallas_src>

<mosaic_0001>
module attributes {stable_mosaic.version = 11 : i64} {
  func.func @byol_fused_kernel(%arg0: memref<512x32xbf16, #tpu.memory_space<vmem>>, %arg1: memref<192x128xbf16, #tpu.memory_space<vmem>>, %arg2: memref<9x128xf32, #tpu.memory_space<vmem>>, %arg3: memref<1x1xf32, #tpu.memory_space<smem>>) attributes {dimension_semantics = [], scalar_prefetch = 0 : i64, scratch_operands = 0 : i64, tpu.core_type = #tpu.core_type<tc>} {
    %c0 = arith.constant 0 : index
    %c0_0 = arith.constant 0 : index
    %0 = vector.load %arg1[%c0, %c0_0] : memref<192x128xbf16, #tpu.memory_space<vmem>>, vector<32x128xbf16>
    %c0_1 = arith.constant 0 : index
    %c0_2 = arith.constant 0 : index
    %1 = vector.load %arg2[%c0_1, %c0_2] : memref<9x128xf32, #tpu.memory_space<vmem>>, vector<1x128xf32>
    %c0_3 = arith.constant 0 : index
    %c0_4 = arith.constant 0 : index
    %2 = vector.load %arg0[%c0_3, %c0_4] : memref<512x32xbf16, #tpu.memory_space<vmem>>, vector<256x32xbf16>
    %cst = arith.constant dense<0.000000e+00> : vector<256x128xf32>
    %3 = tpu.matmul %2, %0, %cst {dimension_numbers = #tpu.dot_dimension_numbers<[1], [0], [0], [1], [0, 0, 1, 1], [], []>} : vector<256x32xbf16>, vector<32x128xbf16>, vector<256x128xf32> -> vector<256x128xf32>
    %4 = vector.broadcast %1 : vector<1x128xf32> to vector<256x128xf32>
    %5 = arith.addf %3, %4 : vector<256x128xf32>
    %cst_5 = arith.constant 0.000000e+00 : f32
    %6 = vector.broadcast %cst_5 : f32 to vector<256x128xf32>
    %7 = arith.maximumf %5, %6 : vector<256x128xf32>
    %cst_6 = arith.constant dense<0.000000e+00> : vector<128xf32>
    %8 = vector.multi_reduction <add>, %7, %cst_6 [0] : vector<256x128xf32> to vector<128xf32>
    %9 = vector.shape_cast %8 : vector<128xf32> to vector<1x128xf32>
    %cst_7 = arith.constant 3.906250e-03 : f32
    %10 = vector.broadcast %cst_7 : f32 to vector<1x128xf32>
    %11 = arith.mulf %9, %10 : vector<1x128xf32>
    %c256 = arith.constant 256 : index
    %c0_8 = arith.constant 0 : index
    %12 = vector.load %arg0[%c256, %c0_8] : memref<512x32xbf16, #tpu.memory_space<vmem>>, vector<256x32xbf16>
    %cst_9 = arith.constant dense<0.000000e+00> : vector<256x128xf32>
    %13 = tpu.matmul %12, %0, %cst_9 {dimension_numbers = #tpu.dot_dimension_numbers<[1], [0], [0], [1], [0, 0, 1, 1], [], []>} : vector<256x32xbf16>, vector<32x128xbf16>, vector<256x128xf32> -> vector<256x128xf32>
    %14 = vector.broadcast %1 : vector<1x128xf32> to vector<256x128xf32>
    %15 = arith.addf %13, %14 : vector<256x128xf32>
    %cst_10 = arith.constant 0.000000e+00 : f32
    %16 = vector.broadcast %cst_10 : f32 to vector<256x128xf32>
    %17 = arith.maximumf %15, %16 : vector<256x128xf32>
    %cst_11 = arith.constant dense<0.000000e+00> : vector<128xf32>
    %18 = vector.multi_reduction <add>, %17, %cst_11 [0] : vector<256x128xf32> to vector<128xf32>
    %19 = vector.shape_cast %18 : vector<128xf32> to vector<1x128xf32>
    %cst_12 = arith.constant 3.906250e-03 : f32
    %20 = vector.broadcast %cst_12 : f32 to vector<1x128xf32>
    %21 = arith.mulf %19, %20 : vector<1x128xf32>
    %22 = tpu.concatenate %11, %21 in 0 : vector<1x128xf32>, vector<1x128xf32> -> vector<2x128xf32>
    %23 = tpu.iota {dimensions = array<i32: 1>} : vector<2x128xi32>
    %c32_i32 = arith.constant 32 : i32
    %24 = vector.broadcast %c32_i32 : i32 to vector<2x128xi32>
    %25 = arith.cmpi slt, %23, %24 : vector<2x128xi32>
    %cst_13 = arith.constant 0.000000e+00 : f32
    %26 = vector.broadcast %cst_13 : f32 to vector<2x128xf32>
    %27 = arith.select %25, %22, %26 : vector<2x128xi1>, vector<2x128xf32>
    %c32_i32_14 = arith.constant 32 : i32
    %28 = vector.broadcast %c32_i32_14 : i32 to vector<2x128xi32>
    %29 = arith.cmpi slt, %23, %28 : vector<2x128xi32>
    %c64_i32 = arith.constant 64 : i32
    %30 = tpu.dynamic_rotate %22 by %c64_i32 dim 1 : vector<2x128xf32>, i32 -> vector<2x128xf32>
    %cst_15 = arith.constant 0.000000e+00 : f32
    %31 = vector.broadcast %cst_15 : f32 to vector<2x128xf32>
    %32 = arith.select %29, %30, %31 : vector<2x128xi1>, vector<2x128xf32>
    %33 = tpu.concatenate %27, %32 in 0 : vector<2x128xf32>, vector<2x128xf32> -> vector<4x128xf32>
    %34 = vector.extract_strided_slice %33 {offsets = [0, 0], sizes = [4, 32], strides = [1, 1]} : vector<4x128xf32> to vector<4x32xf32>
    %35 = arith.truncf %34 : vector<4x32xf32> to vector<4x32xbf16>
    %c32 = arith.constant 32 : index
    %c0_16 = arith.constant 0 : index
    %36 = vector.load %arg1[%c32, %c0_16] : memref<192x128xbf16, #tpu.memory_space<vmem>>, vector<32x128xbf16>
    %cst_17 = arith.constant dense<0.000000e+00> : vector<4x128xf32>
    %37 = tpu.matmul %35, %36, %cst_17 {dimension_numbers = #tpu.dot_dimension_numbers<[1], [0], [0], [1], [0, 0, 1, 1], [], []>} : vector<4x32xbf16>, vector<32x128xbf16>, vector<4x128xf32> -> vector<4x128xf32>
    %c1 = arith.constant 1 : index
    %c0_18 = arith.constant 0 : index
    %38 = vector.load %arg2[%c1, %c0_18] : memref<9x128xf32, #tpu.memory_space<vmem>>, vector<1x128xf32>
    %39 = vector.broadcast %38 : vector<1x128xf32> to vector<4x128xf32>
    %40 = arith.addf %37, %39 : vector<4x128xf32>
    %c2 = arith.constant 2 : index
    %c0_19 = arith.constant 0 : index
    %41 = vector.load %arg2[%c2, %c0_19] : memref<9x128xf32, #tpu.memory_space<vmem>>, vector<1x128xf32>
    %c3 = arith.constant 3 : index
    %c0_20 = arith.constant 0 : index
    %42 = vector.load %arg2[%c3, %c0_20] : memref<9x128xf32, #tpu.memory_space<vmem>>, vector<1x128xf32>
    %cst_21 = arith.constant dense<0.000000e+00> : vector<128xf32>
    %43 = vector.multi_reduction <add>, %40, %cst_21 [0] : vector<4x128xf32> to vector<128xf32>
    %44 = vector.shape_cast %43 : vector<128xf32> to vector<1x128xf32>
    %cst_22 = arith.constant 4.000000e+00 : f32
    %45 = vector.broadcast %cst_22 : f32 to vector<1x128xf32>
    %46 = arith.divf %44, %45 : vector<1x128xf32>
    %47 = vector.broadcast %46 : vector<1x128xf32> to vector<4x128xf32>
    %48 = arith.subf %40, %47 : vector<4x128xf32>
    %49 = vector.broadcast %46 : vector<1x128xf32> to vector<4x128xf32>
    %50 = arith.subf %40, %49 : vector<4x128xf32>
    %51 = arith.mulf %48, %50 : vector<4x128xf32>
    %cst_23 = arith.constant dense<0.000000e+00> : vector<128xf32>
    %52 = vector.multi_reduction <add>, %51, %cst_23 [0] : vector<4x128xf32> to vector<128xf32>
    %53 = vector.shape_cast %52 : vector<128xf32> to vector<1x128xf32>
    %cst_24 = arith.constant 4.000000e+00 : f32
    %54 = vector.broadcast %cst_24 : f32 to vector<1x128xf32>
    %55 = arith.divf %53, %54 : vector<1x128xf32>
    %56 = vector.broadcast %46 : vector<1x128xf32> to vector<4x128xf32>
    %57 = arith.subf %40, %56 : vector<4x128xf32>
    %cst_25 = arith.constant 9.99999974E-6 : f32
    %58 = vector.broadcast %cst_25 : f32 to vector<1x128xf32>
    %59 = arith.addf %55, %58 : vector<1x128xf32>
    %60 = math.rsqrt %59 : vector<1x128xf32>
    %61 = vector.broadcast %60 : vector<1x128xf32> to vector<4x128xf32>
    %62 = arith.mulf %57, %61 : vector<4x128xf32>
    %63 = vector.broadcast %41 : vector<1x128xf32> to vector<4x128xf32>
    %64 = arith.mulf %62, %63 : vector<4x128xf32>
    %65 = vector.broadcast %42 : vector<1x128xf32> to vector<4x128xf32>
    %66 = arith.addf %64, %65 : vector<4x128xf32>
    %cst_26 = arith.constant 0.000000e+00 : f32
    %67 = vector.broadcast %cst_26 : f32 to vector<4x128xf32>
    %68 = arith.maximumf %66, %67 : vector<4x128xf32>
    %69 = vector.extract_strided_slice %68 {offsets = [0, 0], sizes = [4, 64], strides = [1, 1]} : vector<4x128xf32> to vector<4x64xf32>
    %70 = arith.truncf %69 : vector<4x64xf32> to vector<4x64xbf16>
    %c64 = arith.constant 64 : index
    %c0_27 = arith.constant 0 : index
    %71 = vector.load %arg1[%c64, %c0_27] : memref<192x128xbf16, #tpu.memory_space<vmem>>, vector<64x128xbf16>
    %cst_28 = arith.constant dense<0.000000e+00> : vector<4x128xf32>
    %72 = tpu.matmul %70, %71, %cst_28 {dimension_numbers = #tpu.dot_dimension_numbers<[1], [0], [0], [1], [0, 0, 1, 1], [], []>} : vector<4x64xbf16>, vector<64x128xbf16>, vector<4x128xf32> -> vector<4x128xf32>
    %c4 = arith.constant 4 : index
    %c0_29 = arith.constant 0 : index
    %73 = vector.load %arg2[%c4, %c0_29] : memref<9x128xf32, #tpu.memory_space<vmem>>, vector<1x128xf32>
    %74 = vector.broadcast %73 : vector<1x128xf32> to vector<4x128xf32>
    %75 = arith.addf %72, %74 : vector<4x128xf32>
    %76 = tpu.iota {dimensions = array<i32: 1>} : vector<4x128xi32>
    %c16_i32 = arith.constant 16 : i32
    %77 = vector.broadcast %c16_i32 : i32 to vector<4x128xi32>
    %78 = arith.cmpi slt, %76, %77 : vector<4x128xi32>
    %c64_i32_30 = arith.constant 64 : i32
    %79 = tpu.dynamic_rotate %75 by %c64_i32_30 dim 1 : vector<4x128xf32>, i32 -> vector<4x128xf32>
    %cst_31 = arith.constant 0.000000e+00 : f32
    %80 = vector.broadcast %cst_31 : f32 to vector<4x128xf32>
    %81 = arith.select %78, %79, %80 : vector<4x128xi1>, vector<4x128xf32>
    %82 = vector.extract_strided_slice %75 {offsets = [0, 0], sizes = [4, 32], strides = [1, 1]} : vector<4x128xf32> to vector<4x32xf32>
    %83 = arith.truncf %82 : vector<4x32xf32> to vector<4x32xbf16>
    %c128 = arith.constant 128 : index
    %c0_32 = arith.constant 0 : index
    %84 = vector.load %arg1[%c128, %c0_32] : memref<192x128xbf16, #tpu.memory_space<vmem>>, vector<32x128xbf16>
    %cst_33 = arith.constant dense<0.000000e+00> : vector<4x128xf32>
    %85 = tpu.matmul %83, %84, %cst_33 {dimension_numbers = #tpu.dot_dimension_numbers<[1], [0], [0], [1], [0, 0, 1, 1], [], []>} : vector<4x32xbf16>, vector<32x128xbf16>, vector<4x128xf32> -> vector<4x128xf32>
    %c5 = arith.constant 5 : index
    %c0_34 = arith.constant 0 : index
    %86 = vector.load %arg2[%c5, %c0_34] : memref<9x128xf32, #tpu.memory_space<vmem>>, vector<1x128xf32>
    %87 = vector.broadcast %86 : vector<1x128xf32> to vector<4x128xf32>
    %88 = arith.addf %85, %87 : vector<4x128xf32>
    %c6 = arith.constant 6 : index
    %c0_35 = arith.constant 0 : index
    %89 = vector.load %arg2[%c6, %c0_35] : memref<9x128xf32, #tpu.memory_space<vmem>>, vector<1x128xf32>
    %c7 = arith.constant 7 : index
    %c0_36 = arith.constant 0 : index
    %90 = vector.load %arg2[%c7, %c0_36] : memref<9x128xf32, #tpu.memory_space<vmem>>, vector<1x128xf32>
    %cst_37 = arith.constant dense<0.000000e+00> : vector<128xf32>
    %91 = vector.multi_reduction <add>, %88, %cst_37 [0] : vector<4x128xf32> to vector<128xf32>
    %92 = vector.shape_cast %91 : vector<128xf32> to vector<1x128xf32>
    %cst_38 = arith.constant 4.000000e+00 : f32
    %93 = vector.broadcast %cst_38 : f32 to vector<1x128xf32>
    %94 = arith.divf %92, %93 : vector<1x128xf32>
    %95 = vector.broadcast %94 : vector<1x128xf32> to vector<4x128xf32>
    %96 = arith.subf %88, %95 : vector<4x128xf32>
    %97 = vector.broadcast %94 : vector<1x128xf32> to vector<4x128xf32>
    %98 = arith.subf %88, %97 : vector<4x128xf32>
    %99 = arith.mulf %96, %98 : vector<4x128xf32>
    %cst_39 = arith.constant dense<0.000000e+00> : vector<128xf32>
    %100 = vector.multi_reduction <add>, %99, %cst_39 [0] : vector<4x128xf32> to vector<128xf32>
    %101 = vector.shape_cast %100 : vector<128xf32> to vector<1x128xf32>
    %cst_40 = arith.constant 4.000000e+00 : f32
    %102 = vector.broadcast %cst_40 : f32 to vector<1x128xf32>
    %103 = arith.divf %101, %102 : vector<1x128xf32>
    %104 = vector.broadcast %94 : vector<1x128xf32> to vector<4x128xf32>
    %105 = arith.subf %88, %104 : vector<4x128xf32>
    %cst_41 = arith.constant 9.99999974E-6 : f32
    %106 = vector.broadcast %cst_41 : f32 to vector<1x128xf32>
    %107 = arith.addf %103, %106 : vector<1x128xf32>
    %108 = math.rsqrt %107 : vector<1x128xf32>
    %109 = vector.broadcast %108 : vector<1x128xf32> to vector<4x128xf32>
    %110 = arith.mulf %105, %109 : vector<4x128xf32>
    %111 = vector.broadcast %89 : vector<1x128xf32> to vector<4x128xf32>
    %112 = arith.mulf %110, %111 : vector<4x128xf32>
    %113 = vector.broadcast %90 : vector<1x128xf32> to vector<4x128xf32>
    %114 = arith.addf %112, %113 : vector<4x128xf32>
    %cst_42 = arith.constant 0.000000e+00 : f32
    %115 = vector.broadcast %cst_42 : f32 to vector<4x128xf32>
    %116 = arith.maximumf %114, %115 : vector<4x128xf32>
    %117 = vector.extract_strided_slice %116 {offsets = [0, 0], sizes = [4, 32], strides = [1, 1]} : vector<4x128xf32> to vector<4x32xf32>
    %118 = arith.truncf %117 : vector<4x32xf32> to vector<4x32xbf16>
    %c160 = arith.constant 160 : index
    %c0_43 = arith.constant 0 : index
    %119 = vector.load %arg1[%c160, %c0_43] : memref<192x128xbf16, #tpu.memory_space<vmem>>, vector<32x128xbf16>
    %cst_44 = arith.constant dense<0.000000e+00> : vector<4x128xf32>
    %120 = tpu.matmul %118, %119, %cst_44 {dimension_numbers = #tpu.dot_dimension_numbers<[1], [0], [0], [1], [0, 0, 1, 1], [], []>} : vector<4x32xbf16>, vector<32x128xbf16>, vector<4x128xf32> -> vector<4x128xf32>
    %c8 = arith.constant 8 : index
    %c0_45 = arith.constant 0 : index
    %121 = vector.load %arg2[%c8, %c0_45] : memref<9x128xf32, #tpu.memory_space<vmem>>, vector<1x128xf32>
    %122 = vector.broadcast %121 : vector<1x128xf32> to vector<4x128xf32>
    %123 = arith.addf %120, %122 : vector<4x128xf32>
    %c16_i32_46 = arith.constant 16 : i32
    %124 = vector.broadcast %c16_i32_46 : i32 to vector<4x128xi32>
    %125 = arith.cmpi slt, %76, %124 : vector<4x128xi32>
    %cst_47 = arith.constant 0.000000e+00 : f32
    %126 = vector.broadcast %cst_47 : f32 to vector<4x128xf32>
    %127 = arith.select %125, %123, %126 : vector<4x128xi1>, vector<4x128xf32>
    %128 = arith.mulf %127, %127 : vector<4x128xf32>
    %cst_48 = arith.constant dense<0.000000e+00> : vector<4xf32>
    %129 = vector.multi_reduction <add>, %128, %cst_48 [1] : vector<4x128xf32> to vector<4xf32>
    %130 = vector.shape_cast %129 : vector<4xf32> to vector<4x1xf32>
    %131 = math.sqrt %130 : vector<4x1xf32>
    %cst_49 = arith.constant 9.99999996E-13 : f32
    %132 = vector.broadcast %cst_49 : f32 to vector<4x1xf32>
    %133 = arith.maximumf %131, %132 : vector<4x1xf32>
    %134 = vector.broadcast %133 : vector<4x1xf32> to vector<4x128xf32>
    %135 = arith.divf %127, %134 : vector<4x128xf32>
    %136 = arith.mulf %81, %81 : vector<4x128xf32>
    %cst_50 = arith.constant dense<0.000000e+00> : vector<4xf32>
    %137 = vector.multi_reduction <add>, %136, %cst_50 [1] : vector<4x128xf32> to vector<4xf32>
    %138 = vector.shape_cast %137 : vector<4xf32> to vector<4x1xf32>
    %139 = math.sqrt %138 : vector<4x1xf32>
    %cst_51 = arith.constant 9.99999996E-13 : f32
    %140 = vector.broadcast %cst_51 : f32 to vector<4x1xf32>
    %141 = arith.maximumf %139, %140 : vector<4x1xf32>
    %142 = vector.broadcast %141 : vector<4x1xf32> to vector<4x128xf32>
    %143 = arith.divf %81, %142 : vector<4x128xf32>
    %144 = vector.extract_strided_slice %135 {offsets = [0, 0], sizes = [2, 128], strides = [1, 1]} : vector<4x128xf32> to vector<2x128xf32>
    %145 = vector.extract_strided_slice %143 {offsets = [2, 0], sizes = [2, 128], strides = [1, 1]} : vector<4x128xf32> to vector<2x128xf32>
    %146 = arith.mulf %144, %145 : vector<2x128xf32>
    %cst_52 = arith.constant dense<0.000000e+00> : vector<2xf32>
    %147 = vector.multi_reduction <add>, %146, %cst_52 [1] : vector<2x128xf32> to vector<2xf32>
    %148 = vector.shape_cast %147 : vector<2xf32> to vector<2x1xf32>
    %149 = vector.extract_strided_slice %135 {offsets = [2, 0], sizes = [2, 128], strides = [1, 1]} : vector<4x128xf32> to vector<2x128xf32>
    %150 = vector.extract_strided_slice %143 {offsets = [0, 0], sizes = [2, 128], strides = [1, 1]} : vector<4x128xf32> to vector<2x128xf32>
    %151 = arith.mulf %149, %150 : vector<2x128xf32>
    %cst_53 = arith.constant dense<0.000000e+00> : vector<2xf32>
    %152 = vector.multi_reduction <add>, %151, %cst_53 [1] : vector<2x128xf32> to vector<2xf32>
    %153 = vector.shape_cast %152 : vector<2xf32> to vector<2x1xf32>
    %cst_54 = arith.constant 2.000000e+00 : f32
    %154 = vector.broadcast %cst_54 : f32 to vector<2x1xf32>
    %155 = arith.mulf %154, %148 : vector<2x1xf32>
    %cst_55 = arith.constant 2.000000e+00 : f32
    %156 = vector.broadcast %cst_55 : f32 to vector<2x1xf32>
    %157 = arith.subf %156, %155 : vector<2x1xf32>
    %cst_56 = arith.constant 2.000000e+00 : f32
    %158 = vector.broadcast %cst_56 : f32 to vector<2x1xf32>
    %159 = arith.mulf %158, %153 : vector<2x1xf32>
    %cst_57 = arith.constant 2.000000e+00 : f32
    %160 = vector.broadcast %cst_57 : f32 to vector<2x1xf32>
    %161 = arith.subf %160, %159 : vector<2x1xf32>
    %162 = arith.addf %157, %161 : vector<2x1xf32>
    %163 = vector.shape_cast %162 : vector<2x1xf32> to vector<1x2x1xf32>
    %cst_58 = arith.constant dense<0.000000e+00> : vector<1xf32>
    %164 = vector.multi_reduction <add>, %163, %cst_58 [1, 2] : vector<1x2x1xf32> to vector<1xf32>
    %165 = vector.shape_cast %164 : vector<1xf32> to vector<1x1x1xf32>
    %166 = vector.extract %165[0, 0, 0] : f32 from vector<1x1x1xf32>
    %cst_59 = arith.constant 2.000000e+00 : f32
    %167 = arith.divf %166, %cst_59 : f32
    %c0_60 = arith.constant 0 : index
    %c0_61 = arith.constant 0 : index
    %168 = memref.load %arg3[%c0_60, %c0_61] : memref<1x1xf32, #tpu.memory_space<smem>>
    memref.store %167, %arg3[%c0_60, %c0_61] : memref<1x1xf32, #tpu.memory_space<smem>>
    return
  }
}

</mosaic_0001>

<bundles_post_ra>
// kernel: byol_forward.1
= control target key start
LH: loop header
LB: loop body
LE: loop exit
PB: predicated region body
PF: predicated region fallthrough
CT: control target
= control target key end

     0   :  { %vm149_vm0 = vcmask 261120   ;;  %s1923_s0 = inlined_call_operand.vmem [shape: bf16[512,32], index: 0, kind: input, shape index: {}]   ;;  %s1924_s1 = inlined_call_operand.vmem [shape: bf16[192,128], index: 1, kind: input, shape index: {}]   ;;  %s1925_s2 = inlined_call_operand.vmem [shape: f32[9,128], index: 2, kind: input, shape index: {}]   ;;  %s1926_s3 = inlined_call_operand.hbm [shape: f32[1,1], index: 3, kind: output, shape index: {}]  }
   0x1   :  { %v1518_v0 = vld [vmem:[%s1924_s1] sm:$0xff]   ;;  %v1519_v1 = vld [vmem:[%s1924_s1 + $0x8] sm:$0xff]   ;;  %v1524_v6 = vld [vmem:[%s1923_s0 + $0x10] sm:$0xff]  }
   0x2   :  { %1404 = vmatprep.subr.bf16.mxu0 %v1518_v0  ;;  %1440 = vmatprep.subr.bf16.mxu1 %v1518_v0  ;;  %v1520_v2 = vld [vmem:[%s1923_s0] sm:$0xff]   ;;  %v1522_v4 = vld [vmem:[%s1923_s0 + $0x8] sm:$0xff]   ;;  %v1525_v7 = vld [vmem:[%s1923_s0 + $0x90] sm:$0xff]  }
   0x3   :  { %1405 = vmatpush3.bf16.msra.mxu0 %v1518_v0  ;;  %1441 = vmatpush3.bf16.msra.mxu1 %v1518_v0  ;;  %v1521_v3 = vld [vmem:[%s1923_s0 + $0x80] sm:$0xff]   ;;  %v1523_v5 = vld [vmem:[%s1923_s0 + $0x88] sm:$0xff]   ;;  %v1526_v8 = vld [vmem:[%s1923_s0 + $0x18] sm:$0xff]  }
   0x4   :  { %1406 = vmatprep.subr.bf16.mxu0 %v1519_v1  ;;  %1442 = vmatprep.subr.bf16.mxu1 %v1519_v1  ;;  %v1527_v9 = vld [vmem:[%s1923_s0 + $0x98] sm:$0xff]   ;;  %v1528_v10 = vld [vmem:[%s1923_s0 + $0x20] sm:$0xff]   ;;  %v1530_v12 = vld [vmem:[%s1923_s0 + $0x28] sm:$0xff]  }
   0x5   :  { %1408 = vmatprep.mubr.msk.bf16.mxu0 %vm149_vm0, %v1520_v2  ;;  %1444 = vmatprep.mubr.msk.bf16.mxu1 %vm149_vm0, %v1521_v3  ;;  %v1529_v11 = vld [vmem:[%s1923_s0 + $0xa0] sm:$0xff]   ;;  %v1531_v13 = vld [vmem:[%s1923_s0 + $0xa8] sm:$0xff]   ;;  %v1532_v14 = vld [vmem:[%s1923_s0 + $0x30] sm:$0xff]  }
   0x6   :  { %v1533_v15 = vld [vmem:[%s1923_s0 + $0xb0] sm:$0xff]   ;;  %v1534_v16 = vld [vmem:[%s1923_s0 + $0x38] sm:$0xff]   ;;  %v1536_v18 = vld [vmem:[%s1923_s0 + $0x40] sm:$0xff]  }
   0x7   :  { %1407 = vmatpush3.bf16.msra.mxu0 %v1519_v1  ;;  %1443 = vmatpush3.bf16.msra.mxu1 %v1519_v1  ;;  %v1535_v17 = vld [vmem:[%s1923_s0 + $0xb8] sm:$0xff]   ;;  %v1537_v19 = vld [vmem:[%s1923_s0 + $0xc0] sm:$0xff]   ;;  %v1538_v20 = vld [vmem:[%s1923_s0 + $0x48] sm:$0xff]  }
   0x8   :  { %v1539_v21 = vld [vmem:[%s1923_s0 + $0xc8] sm:$0xff]   ;;  %v1540_v22 = vld [vmem:[%s1923_s0 + $0x50] sm:$0xff]  }
   0x9   :  { %v1541_v23 = vld [vmem:[%s1923_s0 + $0xd0] sm:$0xff]  }
   0xa   :  { %1409 = vmatmul.mubr.msk.bf16.vlgmr.msra.gmra.mrb[0].mxu0 %vm149_vm0, %v1522_v4  ;;  %1445 = vmatmul.mubr.msk.bf16.vlgmr.msra.gmra.mrb[0].mxu1 %vm149_vm0, %v1523_v5 }
   0xb   :  { %1412 = vmatprep.mubr.msk.bf16.mxu0 %vm149_vm0, %v1524_v6  ;;  %1448 = vmatprep.mubr.msk.bf16.mxu1 %vm149_vm0, %v1525_v7 }
  0x12   :  { %1413 = vmatmul.mubr.msk.bf16.gmra.mrb[4].mxu0 %vm149_vm0, %v1526_v8  ;;  %1449 = vmatmul.mubr.msk.bf16.gmra.mrb[4].mxu1 %vm149_vm0, %v1527_v9 }
  0x13   :  { %1416 = vmatprep.mubr.msk.bf16.mxu0 %vm149_vm0, %v1528_v10  ;;  %1452 = vmatprep.mubr.msk.bf16.mxu1 %vm149_vm0, %v1529_v11 }
  0x1a   :  { %1417 = vmatmul.mubr.msk.bf16.gmra.mrb[8].mxu0 %vm149_vm0, %v1530_v12  ;;  %1453 = vmatmul.mubr.msk.bf16.gmra.mrb[8].mxu1 %vm149_vm0, %v1531_v13 }
  0x1b   :  { %1420 = vmatprep.mubr.msk.bf16.mxu0 %vm149_vm0, %v1532_v14  ;;  %1456 = vmatprep.mubr.msk.bf16.mxu1 %vm149_vm0, %v1533_v15 }
  0x22   :  { %1421 = vmatmul.mubr.msk.bf16.gmra.mrb[12].mxu0 %vm149_vm0, %v1534_v16  ;;  %1457 = vmatmul.mubr.msk.bf16.gmra.mrb[12].mxu1 %vm149_vm0, %v1535_v17 }
  0x23   :  { %1424 = vmatprep.mubr.msk.bf16.mxu0 %vm149_vm0, %v1536_v18  ;;  %1460 = vmatprep.mubr.msk.bf16.mxu1 %vm149_vm0, %v1537_v19 }
  0x24   :  { %8 = vsyncpa [#allocation3], 0  ;;  %v1542_v24 = vld [vmem:[%s1923_s0 + $0x58] sm:$0xff]   ;;  %v1544_v26 = vld [vmem:[%s1923_s0 + $0x60] sm:$0xff]   ;;  %v1586_v35 = vmov 0.0   ;;  %vm1587_vm1 = vmmov 0  }
  0x25   :  { %v1543_v25 = vld [vmem:[%s1923_s0 + $0xd8] sm:$0xff]   ;;  %v1545_v27 = vld [vmem:[%s1923_s0 + $0xe0] sm:$0xff]   ;;  %v1546_v28 = vld [vmem:[%s1923_s0 + $0x68] sm:$0xff]   ;;  %1476 = vmatprep.subr.bf16.mxu0 %v1586_v35  ;;  %1484 = vmatprep.subr.bf16.mxu1 %v1586_v35  ;;  %vm820_vm2 = vcmask 1040384   ;;  %s1588_s6 = smov 64   ;;  %vm832_vm4 = vcmask 1041408  }
  0x26   :  { %v1547_v29 = vld [vmem:[%s1923_s0 + $0xe8] sm:$0xff]   ;;  %v1548_v30 = vld [vmem:[%s1923_s0 + $0x70] sm:$0xff]   ;;  %v1550_v32 = vld [vmem:[%s1923_s0 + $0x78] sm:$0xff]   ;;  %vm901_vm5 = vcmask 1043456   ;;  %vm973_vm6 = vcmask 523264   ;;  %vm1224_vm12 = vcmask 1043458  }
  0x27   :  { %v1549_v31 = vld [vmem:[%s1923_s0 + $0xf0] sm:$0xff]   ;;  %v1551_v33 = vld [vmem:[%s1923_s0 + $0xf8] sm:$0xff]   ;;  %v1757_v37 = vld [vmem:[%s1925_s2] ss:$0 sm:$0xff]  ;;  %vm1236_vm13 = vcmask 1024   ;;  %s1574_s11 = scalar_lea.hbm %s1926_s3, 16 }
  0x28   :  { %v1552_v34 = vld [vmem:[%s1924_s1 + $0x10] sm:$0xff]   ;;  %v1553_v36 = vld [vmem:[%s1924_s1 + $0x18] sm:$0xff]   ;;  %p1575_p0 = scmp.ne.s32.totalorder %s1926_s3, %s1574_s11  ;;  %p1578_p1 = scmp.lt.u32.totalorder %s1574_s11, %s1926_s3 }
  0x29   :  { %1477 = vmatpush3.bf16.msra.mxu0 %v1552_v34 }
  0x2a   :  { %1425 = vmatmul.mubr.msk.bf16.gmra.mrb[16].mxu0 %vm149_vm0, %v1538_v20  ;;  %1461 = vmatmul.mubr.msk.bf16.gmra.mrb[16].mxu1 %vm149_vm0, %v1539_v21  ;;  %p1580_p2 = pnand %p1578_p1, %p1575_p0 }
  0x2b   :  { %1428 = vmatprep.mubr.msk.bf16.mxu0 %vm149_vm0, %v1540_v22  ;;  %1464 = vmatprep.mubr.msk.bf16.mxu1 %vm149_vm0, %v1541_v23 }
  0x2c   :  { %1478 = vmatprep.subr.bf16.mxu0 %v1586_v35 }
  0x2d   :  { %1479 = vmatpush3.bf16.msra.mxu0 %v1553_v36 }
  0x2e   :  { %1496 = vmatprep.subr.bf16.mxu0 %v1586_v35 }
  0x32   :  { %1429 = vmatmul.mubr.msk.bf16.gmra.mrb[20].mxu0 %vm149_vm0, %v1542_v24  ;;  %1465 = vmatmul.mubr.msk.bf16.gmra.mrb[20].mxu1 %vm149_vm0, %v1543_v25 }
  0x33   :  { %1432 = vmatprep.mubr.msk.bf16.mxu0 %vm149_vm0, %v1544_v26  ;;  %1468 = vmatprep.mubr.msk.bf16.mxu1 %vm149_vm0, %v1545_v27 }
  0x3a   :  { %1433 = vmatmul.mubr.msk.bf16.gmra.mrb[24].mxu0 %vm149_vm0, %v1546_v28  ;;  %1469 = vmatmul.mubr.msk.bf16.gmra.mrb[24].mxu1 %vm149_vm0, %v1547_v29 }
  0x3b   :  { %1436 = vmatprep.mubr.msk.bf16.mxu0 %vm149_vm0, %v1548_v30  ;;  %1472 = vmatprep.mubr.msk.bf16.mxu1 %vm149_vm0, %v1549_v31 }
  0x42   :  { %1437 = vmatmul.mubr.msk.bf16.gmra.mrb[28].mxu0 %vm149_vm0, %v1550_v32  ;;  %1473 = vmatmul.mubr.msk.bf16.gmra.mrb[28].mxu1 %vm149_vm0, %v1551_v33 }
  0x43   :  { %1480 = vmatprep.mubr.msk.bf16.mxu0 %vm1587_vm1, %v1586_v35  ;;  %1492 = vmatprep.mubr.msk.bf16.mxu1 %vm1587_vm1, %v1586_v35 }
  0xdd   :  { %v1410_v38 = vpop.f32.mrb[0].mxu0  ;;  %v1446_v39 = vpop.f32.mrb[0].mxu1 }
  0xde   :  { %v232_v40 = vpop.f32.mrb[1].mxu0  ;;  %v623_v41 = vpop.f32.mrb[1].mxu1  ;;  %v241_v48 = vadd.f32 %v1410_v38, %v1757_v37  ;;  %v632_v49 = vadd.f32 %v1446_v39, %v1757_v37 }
  0xdf   :  { %v233_v42 = vadd.f32 %v1757_v37, %v232_v40  ;;  %v624_v43 = vadd.f32 %v1757_v37, %v623_v41  ;;  %v1411_v44 = vpop.f32.mrb[2].mxu0  ;;  %v1447_v45 = vpop.f32.mrb[2].mxu1 }
  0xe0   :  { %v235_v46 = vpop.f32.mrb[3].mxu0  ;;  %v626_v47 = vpop.f32.mrb[3].mxu1  ;;  %v244_v52 = vadd.f32 %v1411_v44, %v1757_v37  ;;  %v635_v53 = vadd.f32 %v1447_v45, %v1757_v37  ;;  %v361_v58 = vmax.f32 %v241_v48, 0.0  ;;  %v752_v59 = vmax.f32 %v632_v49, 0.0 }
  0xe1   :  { %v236_v50 = vadd.f32 %v1757_v37, %v235_v46  ;;  %v627_v51 = vadd.f32 %v1757_v37, %v626_v47  ;;  %v359_v54 = vmax.f32 %v233_v42, 0.0  ;;  %v750_v55 = vmax.f32 %v624_v43, 0.0 }
  0xe2   :  { %v362_v0 = vmax.f32 %v244_v52, 0.0  ;;  %v753_v1 = vmax.f32 %v635_v53, 0.0 }
  0xe3   :  { %v360_v56 = vmax.f32 %v236_v50, 0.0  ;;  %v751_v57 = vmax.f32 %v627_v51, 0.0 }
  0xe5   :  { %v391_v60 = vadd.f32 %v360_v56, %v359_v54  ;;  %v782_v61 = vadd.f32 %v751_v57, %v750_v55  ;;  %v1414_v62 = vpop.f32.mrb[4].mxu0  ;;  %v1450_v63 = vpop.f32.mrb[4].mxu1 }
  0xe6   :  { %v248_v2 = vpop.f32.mrb[5].mxu0  ;;  %v639_v3 = vpop.f32.mrb[5].mxu1  ;;  %v257_v16 = vadd.f32 %v1414_v62, %v1757_v37  ;;  %v648_v17 = vadd.f32 %v1450_v63, %v1757_v37 }
  0xe7   :  { %v392_v4 = vadd.f32 %v391_v60, %v361_v58  ;;  %v783_v5 = vadd.f32 %v782_v61, %v752_v59  ;;  %v249_v6 = vadd.f32 %v1757_v37, %v248_v2  ;;  %v640_v7 = vadd.f32 %v1757_v37, %v639_v3  ;;  %v1415_v8 = vpop.f32.mrb[6].mxu0  ;;  %v1451_v9 = vpop.f32.mrb[6].mxu1 }
  0xe8   :  { %v251_v10 = vpop.f32.mrb[7].mxu0  ;;  %v642_v11 = vpop.f32.mrb[7].mxu1  ;;  %v260_v22 = vadd.f32 %v1415_v8, %v1757_v37  ;;  %v651_v23 = vadd.f32 %v1451_v9, %v1757_v37  ;;  %v365_v28 = vmax.f32 %v257_v16, 0.0  ;;  %v756_v29 = vmax.f32 %v648_v17, 0.0 }
  0xe9   :  { %v363_v12 = vmax.f32 %v249_v6, 0.0  ;;  %v393_v13 = vadd.f32 %v392_v4, %v362_v0  ;;  %v754_v14 = vmax.f32 %v640_v7, 0.0  ;;  %v784_v15 = vadd.f32 %v783_v5, %v753_v1 }
  0xea   :  { %v252_v18 = vadd.f32 %v1757_v37, %v251_v10  ;;  %v643_v19 = vadd.f32 %v1757_v37, %v642_v11  ;;  %v366_v40 = vmax.f32 %v260_v22, 0.0  ;;  %v757_v41 = vmax.f32 %v651_v23, 0.0 }
  0xeb   :  { %v394_v20 = vadd.f32 %v393_v13, %v363_v12  ;;  %v785_v21 = vadd.f32 %v784_v15, %v754_v14 }
  0xec   :  { %v364_v24 = vmax.f32 %v252_v18, 0.0  ;;  %v755_v25 = vmax.f32 %v643_v19, 0.0 }
  0xed   :  { %v1418_v26 = vpop.f32.mrb[8].mxu0  ;;  %v1454_v27 = vpop.f32.mrb[8].mxu1 }
  0xee   :  { %v395_v30 = vadd.f32 %v394_v20, %v364_v24  ;;  %v786_v31 = vadd.f32 %v785_v21, %v755_v25  ;;  %v264_v32 = vpop.f32.mrb[9].mxu0  ;;  %v655_v33 = vpop.f32.mrb[9].mxu1  ;;  %v273_v46 = vadd.f32 %v1418_v26, %v1757_v37  ;;  %v664_v47 = vadd.f32 %v1454_v27, %v1757_v37 }
  0xef   :  { %v265_v34 = vadd.f32 %v1757_v37, %v264_v32  ;;  %v656_v36 = vadd.f32 %v1757_v37, %v655_v33  ;;  %v1419_v38 = vpop.f32.mrb[10].mxu0  ;;  %v1455_v39 = vpop.f32.mrb[10].mxu1 }
  0xf0   :  { %v396_v42 = vadd.f32 %v395_v30, %v365_v28  ;;  %v787_v43 = vadd.f32 %v786_v31, %v756_v29  ;;  %v267_v44 = vpop.f32.mrb[11].mxu0  ;;  %v658_v45 = vpop.f32.mrb[11].mxu1  ;;  %v276_v54 = vadd.f32 %v1419_v38, %v1757_v37  ;;  %v667_v55 = vadd.f32 %v1455_v39, %v1757_v37 }
  0xf1   :  { %v367_v48 = vmax.f32 %v265_v34, 0.0  ;;  %v758_v49 = vmax.f32 %v656_v36, 0.0  ;;  %v268_v52 = vadd.f32 %v1757_v37, %v267_v44  ;;  %v659_v53 = vadd.f32 %v1757_v37, %v658_v45 }
  0xf2   :  { %v397_v50 = vadd.f32 %v396_v42, %v366_v40  ;;  %v788_v51 = vadd.f32 %v787_v43, %v757_v41  ;;  %v369_v62 = vmax.f32 %v273_v46, 0.0  ;;  %v760_v63 = vmax.f32 %v664_v47, 0.0 }
  0xf3   :  { %v368_v58 = vmax.f32 %v268_v52, 0.0  ;;  %v759_v59 = vmax.f32 %v659_v53, 0.0  ;;  %v370_v8 = vmax.f32 %v276_v54, 0.0  ;;  %v761_v9 = vmax.f32 %v667_v55, 0.0 }
  0xf4   :  { %v398_v56 = vadd.f32 %v397_v50, %v367_v48  ;;  %v789_v57 = vadd.f32 %v788_v51, %v758_v49 }
  0xf5   :  { %v1422_v60 = vpop.f32.mrb[12].mxu0  ;;  %v1458_v61 = vpop.f32.mrb[12].mxu1 }
  0xf6   :  { %v399_v0 = vadd.f32 %v398_v56, %v368_v58  ;;  %v790_v1 = vadd.f32 %v789_v57, %v759_v59  ;;  %v280_v2 = vpop.f32.mrb[13].mxu0  ;;  %v671_v3 = vpop.f32.mrb[13].mxu1  ;;  %v289_v14 = vadd.f32 %v1422_v60, %v1757_v37  ;;  %v680_v15 = vadd.f32 %v1458_v61, %v1757_v37 }
  0xf7   :  { %v281_v4 = vadd.f32 %v1757_v37, %v280_v2  ;;  %v672_v5 = vadd.f32 %v1757_v37, %v671_v3  ;;  %v1423_v6 = vpop.f32.mrb[14].mxu0  ;;  %v1459_v7 = vpop.f32.mrb[14].mxu1 }
  0xf8   :  { %v400_v10 = vadd.f32 %v399_v0, %v369_v62  ;;  %v791_v11 = vadd.f32 %v790_v1, %v760_v63  ;;  %v283_v12 = vpop.f32.mrb[15].mxu0  ;;  %v674_v13 = vpop.f32.mrb[15].mxu1  ;;  %v292_v22 = vadd.f32 %v1423_v6, %v1757_v37  ;;  %v683_v23 = vadd.f32 %v1459_v7, %v1757_v37 }
  0xf9   :  { %v371_v16 = vmax.f32 %v281_v4, 0.0  ;;  %v762_v17 = vmax.f32 %v672_v5, 0.0  ;;  %v284_v20 = vadd.f32 %v1757_v37, %v283_v12  ;;  %v675_v21 = vadd.f32 %v1757_v37, %v674_v13 }
  0xfa   :  { %v401_v18 = vadd.f32 %v400_v10, %v370_v8  ;;  %v792_v19 = vadd.f32 %v791_v11, %v761_v9  ;;  %v373_v30 = vmax.f32 %v289_v14, 0.0  ;;  %v764_v31 = vmax.f32 %v680_v15, 0.0 }
  0xfb   :  { %v372_v26 = vmax.f32 %v284_v20, 0.0  ;;  %v763_v27 = vmax.f32 %v675_v21, 0.0  ;;  %v374_v42 = vmax.f32 %v292_v22, 0.0  ;;  %v765_v43 = vmax.f32 %v683_v23, 0.0 }
  0xfc   :  { %v402_v24 = vadd.f32 %v401_v18, %v371_v16  ;;  %v793_v25 = vadd.f32 %v792_v19, %v762_v17 }
  0xfd   :  { %v1426_v28 = vpop.f32.mrb[16].mxu0  ;;  %v1462_v29 = vpop.f32.mrb[16].mxu1 }
  0xfe   :  { %v403_v32 = vadd.f32 %v402_v24, %v372_v26  ;;  %v794_v33 = vadd.f32 %v793_v25, %v763_v27  ;;  %v296_v34 = vpop.f32.mrb[17].mxu0  ;;  %v687_v36 = vpop.f32.mrb[17].mxu1  ;;  %v305_v48 = vadd.f32 %v1426_v28, %v1757_v37  ;;  %v696_v49 = vadd.f32 %v1462_v29, %v1757_v37 }
  0xff   :  { %v297_v38 = vadd.f32 %v1757_v37, %v296_v34  ;;  %v688_v39 = vadd.f32 %v1757_v37, %v687_v36  ;;  %v1427_v40 = vpop.f32.mrb[18].mxu0  ;;  %v1463_v41 = vpop.f32.mrb[18].mxu1 }
 0x100   :  { %v404_v44 = vadd.f32 %v403_v32, %v373_v30  ;;  %v795_v45 = vadd.f32 %v794_v33, %v764_v31  ;;  %v299_v46 = vpop.f32.mrb[19].mxu0  ;;  %v690_v47 = vpop.f32.mrb[19].mxu1  ;;  %v308_v56 = vadd.f32 %v1427_v40, %v1757_v37  ;;  %v699_v57 = vadd.f32 %v1463_v41, %v1757_v37 }
 0x101   :  { %v375_v50 = vmax.f32 %v297_v38, 0.0  ;;  %v766_v51 = vmax.f32 %v688_v39, 0.0  ;;  %v300_v54 = vadd.f32 %v1757_v37, %v299_v46  ;;  %v691_v55 = vadd.f32 %v1757_v37, %v690_v47 }
 0x102   :  { %v405_v52 = vadd.f32 %v404_v44, %v374_v42  ;;  %v796_v53 = vadd.f32 %v795_v45, %v765_v43  ;;  %v377_v0 = vmax.f32 %v305_v48, 0.0  ;;  %v768_v1 = vmax.f32 %v696_v49, 0.0 }
 0x103   :  { %v376_v60 = vmax.f32 %v300_v54, 0.0  ;;  %v767_v61 = vmax.f32 %v691_v55, 0.0  ;;  %v378_v10 = vmax.f32 %v308_v56, 0.0  ;;  %v769_v11 = vmax.f32 %v699_v57, 0.0 }
 0x104   :  { %v406_v58 = vadd.f32 %v405_v52, %v375_v50  ;;  %v797_v59 = vadd.f32 %v796_v53, %v766_v51 }
 0x105   :  { %v1430_v62 = vpop.f32.mrb[20].mxu0  ;;  %v1466_v63 = vpop.f32.mrb[20].mxu1 }
 0x106   :  { %v407_v2 = vadd.f32 %v406_v58, %v376_v60  ;;  %v798_v3 = vadd.f32 %v797_v59, %v767_v61  ;;  %v312_v4 = vpop.f32.mrb[21].mxu0  ;;  %v703_v5 = vpop.f32.mrb[21].mxu1  ;;  %v321_v16 = vadd.f32 %v1430_v62, %v1757_v37  ;;  %v712_v17 = vadd.f32 %v1466_v63, %v1757_v37 }
 0x107   :  { %v313_v6 = vadd.f32 %v1757_v37, %v312_v4  ;;  %v704_v7 = vadd.f32 %v1757_v37, %v703_v5  ;;  %v1431_v8 = vpop.f32.mrb[22].mxu0  ;;  %v1467_v9 = vpop.f32.mrb[22].mxu1 }
 0x108   :  { %v408_v12 = vadd.f32 %v407_v2, %v377_v0  ;;  %v799_v13 = vadd.f32 %v798_v3, %v768_v1  ;;  %v315_v14 = vpop.f32.mrb[23].mxu0  ;;  %v706_v15 = vpop.f32.mrb[23].mxu1  ;;  %v324_v24 = vadd.f32 %v1431_v8, %v1757_v37  ;;  %v715_v25 = vadd.f32 %v1467_v9, %v1757_v37 }
 0x109   :  { %v379_v18 = vmax.f32 %v313_v6, 0.0  ;;  %v770_v19 = vmax.f32 %v704_v7, 0.0  ;;  %v316_v22 = vadd.f32 %v1757_v37, %v315_v14  ;;  %v707_v23 = vadd.f32 %v1757_v37, %v706_v15 }
 0x10a   :  { %v409_v20 = vadd.f32 %v408_v12, %v378_v10  ;;  %v800_v21 = vadd.f32 %v799_v13, %v769_v11  ;;  %v381_v32 = vmax.f32 %v321_v16, 0.0  ;;  %v772_v33 = vmax.f32 %v712_v17, 0.0 }
 0x10b   :  { %v380_v28 = vmax.f32 %v316_v22, 0.0  ;;  %v771_v29 = vmax.f32 %v707_v23, 0.0  ;;  %v382_v44 = vmax.f32 %v324_v24, 0.0  ;;  %v773_v45 = vmax.f32 %v715_v25, 0.0 }
 0x10c   :  { %v410_v26 = vadd.f32 %v409_v20, %v379_v18  ;;  %v801_v27 = vadd.f32 %v800_v21, %v770_v19 }
 0x10d   :  { %v1434_v30 = vpop.f32.mrb[24].mxu0  ;;  %v1470_v31 = vpop.f32.mrb[24].mxu1 }
 0x10e   :  { %v411_v34 = vadd.f32 %v410_v26, %v380_v28  ;;  %v802_v36 = vadd.f32 %v801_v27, %v771_v29  ;;  %v328_v38 = vpop.f32.mrb[25].mxu0  ;;  %v719_v39 = vpop.f32.mrb[25].mxu1  ;;  %v337_v50 = vadd.f32 %v1434_v30, %v1757_v37  ;;  %v728_v51 = vadd.f32 %v1470_v31, %v1757_v37 }
 0x10f   :  { %v329_v40 = vadd.f32 %v1757_v37, %v328_v38  ;;  %v720_v41 = vadd.f32 %v1757_v37, %v719_v39  ;;  %v1435_v42 = vpop.f32.mrb[26].mxu0  ;;  %v1471_v43 = vpop.f32.mrb[26].mxu1 }
 0x110   :  { %v412_v46 = vadd.f32 %v411_v34, %v381_v32  ;;  %v803_v47 = vadd.f32 %v802_v36, %v772_v33  ;;  %v331_v48 = vpop.f32.mrb[27].mxu0  ;;  %v722_v49 = vpop.f32.mrb[27].mxu1  ;;  %v340_v58 = vadd.f32 %v1435_v42, %v1757_v37  ;;  %v731_v59 = vadd.f32 %v1471_v43, %v1757_v37 }
 0x111   :  { %v383_v52 = vmax.f32 %v329_v40, 0.0  ;;  %v774_v53 = vmax.f32 %v720_v41, 0.0  ;;  %v332_v56 = vadd.f32 %v1757_v37, %v331_v48  ;;  %v723_v57 = vadd.f32 %v1757_v37, %v722_v49 }
 0x112   :  { %v413_v54 = vadd.f32 %v412_v46, %v382_v44  ;;  %v804_v55 = vadd.f32 %v803_v47, %v773_v45  ;;  %v385_v2 = vmax.f32 %v337_v50, 0.0  ;;  %v776_v3 = vmax.f32 %v728_v51, 0.0 }
 0x113   :  { %v384_v62 = vmax.f32 %v332_v56, 0.0  ;;  %v775_v63 = vmax.f32 %v723_v57, 0.0  ;;  %v386_v12 = vmax.f32 %v340_v58, 0.0  ;;  %v777_v13 = vmax.f32 %v731_v59, 0.0 }
 0x114   :  { %v414_v60 = vadd.f32 %v413_v54, %v383_v52  ;;  %v805_v61 = vadd.f32 %v804_v55, %v774_v53  ;;  %v1554_v53 = vld [vmem:[%s1924_s1 + $0x20] sm:$0xff]   ;;  %v822_v59 = vlaneseq }
 0x115   :  { %v1438_v0 = vpop.f32.mrb[28].mxu0  ;;  %v1474_v1 = vpop.f32.mrb[28].mxu1  ;;  %1485 = vmatpush3.bf16.msra.mxu1 %v1554_v53  ;;  %v1560_v53 = vld [vmem:[%s1924_s1 + $0x50] sm:$0xff]  }
 0x116   :  { %v415_v4 = vadd.f32 %v414_v60, %v384_v62  ;;  %v806_v5 = vadd.f32 %v805_v61, %v775_v63  ;;  %v344_v6 = vpop.f32.mrb[29].mxu0  ;;  %v735_v7 = vpop.f32.mrb[29].mxu1  ;;  %v353_v18 = vadd.f32 %v1438_v0, %v1757_v37  ;;  %v744_v19 = vadd.f32 %v1474_v1, %v1757_v37  ;;  %1486 = vmatprep.subr.bf16.mxu1 %v1586_v35 }
 0x117   :  { %v345_v8 = vadd.f32 %v1757_v37, %v344_v6  ;;  %v736_v9 = vadd.f32 %v1757_v37, %v735_v7  ;;  %v1439_v10 = vpop.f32.mrb[30].mxu0  ;;  %v1475_v11 = vpop.f32.mrb[30].mxu1  ;;  %v1832_v60 = vand.u32 127, %v822_v59  ;;  %v1558_v6 = vld [vmem:[%s1924_s1 + $0x40] sm:$0xff]  }
 0x118   :  { %v416_v14 = vadd.f32 %v415_v4, %v385_v2  ;;  %v807_v15 = vadd.f32 %v806_v5, %v776_v3  ;;  %v347_v16 = vpop.f32.mrb[31].mxu0  ;;  %v738_v17 = vpop.f32.mrb[31].mxu1  ;;  %v356_v26 = vadd.f32 %v1439_v10, %v1757_v37  ;;  %v747_v27 = vadd.f32 %v1475_v11, %v1757_v37  ;;  %v1555_v3 = vld [vmem:[%s1924_s1 + $0x28] sm:$0xff]   ;;  %v1556_v4 = vld [vmem:[%s1924_s1 + $0x30] sm:$0xff]   ;;  %v1557_v5 = vld [vmem:[%s1924_s1 + $0x38] sm:$0xff]  }
 0x119   :  { %v387_v20 = vmax.f32 %v345_v8, 0.0  ;;  %v778_v21 = vmax.f32 %v736_v9, 0.0  ;;  %v348_v24 = vadd.f32 %v1757_v37, %v347_v16  ;;  %v739_v25 = vadd.f32 %v1757_v37, %v738_v17  ;;  %1487 = vmatpush3.bf16.msra.mxu1 %v1555_v3  ;;  %v1332_v7 = vld [vmem:[%s1925_s2 + $0x1] ss:$0 sm:$0xff] }
 0x11a   :  { %v417_v22 = vadd.f32 %v416_v14, %v386_v12  ;;  %v808_v23 = vadd.f32 %v807_v15, %v777_v13  ;;  %v389_v32 = vmax.f32 %v353_v18, 0.0  ;;  %v780_v33 = vmax.f32 %v744_v19, 0.0  ;;  %1488 = vmatprep.subr.bf16.mxu1 %v1586_v35 }
 0x11b   :  { %v388_v30 = vmax.f32 %v348_v24, 0.0  ;;  %v779_v31 = vmax.f32 %v739_v25, 0.0  ;;  %v390_v38 = vmax.f32 %v356_v26, 0.0  ;;  %v781_v39 = vmax.f32 %v747_v27, 0.0 }
 0x11c   :  { %v418_v28 = vadd.f32 %v417_v22, %v387_v20  ;;  %v809_v29 = vadd.f32 %v808_v23, %v778_v21  ;;  %vm824_vm3 = vcmp.lt.s32.totalorder %v1832_v60, 32  ;;  %vm1017_vm7 = vcmp.lt.s32.totalorder %v1832_v60, 16 }
 0x11d   :  { %1489 = vmatpush3.bf16.msra.mxu1 %v1556_v4 }
 0x11e   :  { %v419_v34 = vadd.f32 %v418_v28, %v388_v30  ;;  %v810_v36 = vadd.f32 %v809_v29, %v779_v31  ;;  %1490 = vmatprep.subr.bf16.mxu1 %v1586_v35 }
 0x120   :  { %v420_v40 = vadd.f32 %v419_v34, %v389_v32  ;;  %v811_v41 = vadd.f32 %v810_v36, %v780_v33  ;;  %v1336_v33 = vld [vmem:[%s1925_s2 + $0x2] ss:$0 sm:$0xff]  ;;  %v1337_v36 = vld [vmem:[%s1925_s2 + $0x3] ss:$0 sm:$0xff] }
 0x121   :  { %1491 = vmatpush3.bf16.msra.mxu1 %v1557_v5 }
 0x122   :  { %v421_v42 = vadd.f32 %v420_v40, %v390_v38  ;;  %v812_v43 = vadd.f32 %v811_v41, %v781_v39  ;;  %1504 = vmatprep.subr.bf16.mxu1 %v1586_v35 }
 0x124   :  { %v422_v44 = vrot.slane %v421_v42, 4  ;;  %v813_v45 = vrot.slane %v812_v43, 4 }
 0x126   :  { %v423_v46 = vadd.f32 %v422_v44, %v421_v42  ;;  %v814_v47 = vadd.f32 %v813_v45, %v812_v43  ;;  %v1559_v42 = vld [vmem:[%s1924_s1 + $0x48] sm:$0xff]   ;;  %v1338_v43 = vld [vmem:[%s1925_s2 + $0x4] ss:$0 sm:$0xff] }
 0x128   :  { %v424_v48 = vrot.slane %v423_v46, 2  ;;  %v815_v37 = vrot.slane %v814_v47, 2 }
 0x12a   :  { %v425_v49 = vadd.f32 %v424_v48, %v423_v46  ;;  %v816_v50 = vadd.f32 %v815_v37, %v814_v47 }
 0x12c   :  { %v426_v51 = vrot.slane %v425_v49, 1  ;;  %v817_v52 = vrot.slane %v816_v50, 1 }
 0x12e   :  { %v427_v54 = vadd.f32 %v426_v51, %v425_v49  ;;  %v818_v55 = vadd.f32 %v817_v52, %v816_v50 }
 0x130   :  { %v428_v56 = vmul.f32 0.00390625, %v427_v54  ;;  %v819_v57 = vmul.f32 0.00390625, %v818_v55  ;;  %v1561_v54 = vld [vmem:[%s1924_s1 + $0x58] sm:$0xff]   ;;  %v1344_v55 = vld [vmem:[%s1925_s2 + $0x5] ss:$0 sm:$0xff] }
 0x132   :  { %v821_v58 = vsel %vm820_vm2, %v428_v56, %v819_v57 }
 0x133   :  { %826 = vrot.lane.b32.xlu0 %v821_v58, %s1588_s6  ;;  %v825_v0 = vsel %vm824_vm3, %v821_v58, 0.0 }
 0x1a5   :  { %v827_v61 = vpop.permute.xlu0 %826 }
 0x1a6   :  { %v828_v62 = vsel %vm824_vm3, %v827_v61, 0.0 }
 0x1a7   :  { %v830_v63 = vrot.slane %v828_v62, 6 }
 0x1a9   :  { %v833_v1 = vsel %vm832_vm4, %v825_v0, %v830_v63 }
 0x1aa   :  { %v834_v2 = vpack.c.bf16 %v833_v1, %v833_v1 }
 0x1ac   :  { %1481 = vmatmul.mubr.msk.bf16.vlgmr.msra.gmra.mrb[32].mxu0 %vm149_vm0, %v834_v2 }
 0x1ad   :  { %1500 = vmatprep.mubr.msk.bf16.mxu0 %vm1587_vm1, %v1586_v35  ;;  %1497 = vmatpush3.bf16.msra.mxu0 %v1558_v6 }
 0x1ae   :  { %1498 = vmatprep.subr.bf16.mxu0 %v1586_v35 }
 0x1b1   :  { %1499 = vmatpush3.bf16.msra.mxu0 %v1559_v42 }
 0x27f   :  { %v893_v8 = vpop.f32.mrb[32].mxu0 }
 0x280   :  { %v894_v9 = vadd.f32 %v1332_v7, %v893_v8  ;;  %v1482_v10 = vpop.f32.mrb[33].mxu0 }
 0x281   :  { %v896_v11 = vpop.f32.mrb[34].mxu0 }
 0x282   :  { %v902_v12 = vsel %vm901_vm5, %v894_v9, 0.0  ;;  %v1483_v13 = vpop.f32.mrb[35].mxu0 }
 0x283   :  { %v903_v14 = vrot.slane %v902_v12, 4 }
 0x285   :  { %v904_v15 = vadd.f32 %v903_v14, %v902_v12 }
 0x287   :  { %v905_v16 = vrot.slane %v904_v15, 2 }
 0x289   :  { %v906_v17 = vadd.f32 %v905_v16, %v904_v15 }
 0x28b   :  { %v907_v18 = vrot.slane %v906_v17, 1 }
 0x28d   :  { %v908_v19 = vadd.f32 %v907_v18, %v906_v17  ;;  %v1348_v17 = vld [vmem:[%s1925_s2 + $0x6] ss:$0 sm:$0xff] }
 0x28f   :  { %v910_v20 = vmul.f32 0.25, %v908_v19  ;;  %v1349_v19 = vld [vmem:[%s1925_s2 + $0x7] ss:$0 sm:$0xff] }
 0x291   :  { %v911_v21 = vsub.f32 %v894_v9, %v910_v20 }
 0x293   :  { %v912_v22 = vmul.f32 %v911_v21, %v911_v21 }
 0x295   :  { %v913_v23 = vsel %vm901_vm5, %v912_v22, 0.0 }
 0x296   :  { %v914_v24 = vrot.slane %v913_v23, 4 }
 0x298   :  { %v915_v25 = vadd.f32 %v914_v24, %v913_v23  ;;  %v1350_v24 = vld [vmem:[%s1925_s2 + $0x8] ss:$0 sm:$0xff] }
 0x29a   :  { %v916_v26 = vrot.slane %v915_v25, 2 }
 0x29c   :  { %v917_v27 = vadd.f32 %v916_v26, %v915_v25 }
 0x29e   :  { %v918_v28 = vrot.slane %v917_v27, 1 }
 0x2a0   :  { %v919_v29 = vadd.f32 %v918_v28, %v917_v27 }
 0x2a2   :  { %v920_v30 = vmul.f32 0.25, %v919_v29 }
 0x2a4   :  { %v921_v31 = vadd.f32 1e-05, %v920_v30 }
 0x2a6   :  { %1562 = vrsqrt.f32 %v921_v31 }
 0x2b0   :  { %v1563_v32 = vpop.eup %1562 }
 0x2b1   :  { %v923_v34 = vmul.f32 %v1563_v32, %v911_v21 }
 0x2b3   :  { %v928_v38 = vmul.f32 %v1336_v33, %v923_v34 }
 0x2b5   :  { %v933_v39 = vadd.f32 %v1337_v36, %v928_v38 }
 0x2b7   :  { %v934_v40 = vmax.f32 %v933_v39, 0.0 }
 0x2b9   :  { %v935_v41 = vpack.c.bf16 %v934_v40, %v934_v40 }
 0x2bb   :  { %1493 = vmatmul.mubr.msk.bf16.vlgmr.msra.gmra.mrb[32].mxu1 %vm973_vm6, %v935_v41 }
 0x2bc   :  { %1508 = vmatprep.mubr.msk.bf16.mxu1 %vm1587_vm1, %v1586_v35  ;;  %1505 = vmatpush3.bf16.msra.mxu1 %v1560_v53 }
 0x2bd   :  { %1506 = vmatprep.subr.bf16.mxu1 %v1586_v35 }
 0x2c0   :  { %1507 = vmatpush3.bf16.msra.mxu1 %v1561_v54 }
 0x38e   :  { %v1011_v44 = vpop.f32.mrb[32].mxu1 }
 0x38f   :  { %v1012_v45 = vadd.f32 %v1338_v43, %v1011_v44  ;;  %v1494_v46 = vpop.f32.mrb[33].mxu1 }
 0x390   :  { %v1014_v47 = vpop.f32.mrb[34].mxu1 }
 0x391   :  { %v1021_v48 = vpack.c.bf16 %v1012_v45, %v1012_v45  ;;  %1018 = vrot.lane.b32.xlu0 %v1012_v45, %s1588_s6  ;;  %v1495_v37 = vpop.f32.mrb[35].mxu1 }
 0x393   :  { %1501 = vmatmul.mubr.msk.bf16.vlgmr.msra.gmra.mrb[36].mxu0 %vm149_vm0, %v1021_v48 }
 0x403   :  { %v1019_v49 = vpop.permute.xlu0 %1018 }
 0x404   :  { %v1879_v50 = vsel %vm1017_vm7, %v1019_v49, 0.0 }
 0x405   :  { %v1200_v51 = vmul.f32 %v1879_v50, %v1879_v50 }
 0x407   :  { %v1201_v52 = vsel %vm901_vm5, %v1200_v51, 0.0 }
 0x408   :  { %1202 = vadd.xlane.f32.xlu1 %v1201_v52 }
 0x466   :  { %v1080_v56 = vpop.f32.mrb[36].mxu0 }
 0x467   :  { %v1081_v57 = vadd.f32 %v1344_v55, %v1080_v56  ;;  %v1502_v58 = vpop.f32.mrb[37].mxu0 }
 0x468   :  { %v1083_v59 = vpop.f32.mrb[38].mxu0 }
 0x469   :  { %v1088_v61 = vsel %vm901_vm5, %v1081_v57, 0.0  ;;  %v1503_v62 = vpop.f32.mrb[39].mxu0 }
 0x46a   :  { %v1089_v63 = vrot.slane %v1088_v61, 4 }
 0x46c   :  { %v1090_v0 = vadd.f32 %v1089_v63, %v1088_v61 }
 0x46e   :  { %v1091_v1 = vrot.slane %v1090_v0, 2 }
 0x470   :  { %v1092_v35 = vadd.f32 %v1091_v1, %v1090_v0 }
 0x472   :  { %v1093_v2 = vrot.slane %v1092_v35, 1 }
 0x474   :  { %v1094_v3 = vadd.f32 %v1093_v2, %v1092_v35 }
 0x476   :  { %v1095_v4 = vmul.f32 0.25, %v1094_v3 }
 0x478   :  { %v1096_v5 = vsub.f32 %v1081_v57, %v1095_v4 }
 0x47a   :  { %v1097_v6 = vmul.f32 %v1096_v5, %v1096_v5 }
 0x47c   :  { %v1098_v7 = vsel %vm901_vm5, %v1097_v6, 0.0 }
 0x47d   :  { %v1099_v8 = vrot.slane %v1098_v7, 4 }
 0x47f   :  { %v1100_v9 = vadd.f32 %v1099_v8, %v1098_v7 }
 0x481   :  { %v1101_v10 = vrot.slane %v1100_v9, 2 }
 0x483   :  { %v1102_v11 = vadd.f32 %v1101_v10, %v1100_v9 }
 0x485   :  { %v1103_v12 = vrot.slane %v1102_v11, 1 }
 0x487   :  { %v1104_v13 = vadd.f32 %v1103_v12, %v1102_v11 }
 0x489   :  { %v1105_v14 = vmul.f32 0.25, %v1104_v13 }
 0x48b   :  { %v1106_v15 = vadd.f32 1e-05, %v1105_v14 }
 0x48d   :  { %1564 = vrsqrt.f32 %v1106_v15 }
 0x495   :  { %v1203_v33 = vpop.xlane.xlu1 %1202 }
 0x496   :  { %1566 = vrsqrt.f32 %v1203_v33  ;;  %vm1206_vm8 = vcmp.eq.f32.partialorder %v1203_v33, inf  ;;  %v1209_v40 = vand.u32 2147483648, %v1203_v33  ;;  %vm1208_vm9 = vcmp.eq.f32.partialorder %v1203_v33, 0.0 }
 0x497   :  { %v1565_v16 = vpop.eup %1564 }
 0x498   :  { %v1108_v18 = vmul.f32 %v1565_v16, %v1096_v5 }
 0x49a   :  { %v1113_v20 = vmul.f32 %v1348_v17, %v1108_v18 }
 0x49c   :  { %v1118_v21 = vadd.f32 %v1349_v19, %v1113_v20 }
 0x49e   :  { %v1119_v22 = vmax.f32 %v1118_v21, 0.0 }
 0x4a0   :  { %v1120_v23 = vpack.c.bf16 %v1119_v22, %v1119_v22  ;;  %v1567_v34 = vpop.eup %1566 }
 0x4a1   :  { %v1205_v36 = vmul.f32 %v1567_v34, %v1203_v33 }
 0x4a2   :  { %1509 = vmatmul.mubr.msk.bf16.vlgmr.msra.gmra.mrb[36].mxu1 %vm149_vm0, %v1120_v23 }
 0x4a3   :  { %v1207_v39 = vsel %vm1206_vm8, %v1203_v33, %v1205_v36 }
 0x4a4   :  { %v1210_v41 = vsel %vm1208_vm9, %v1209_v40, %v1207_v39 }
 0x4a5   :  { %v1211_v42 = vmax.f32 %v1210_v41, 1e-12 }
 0x575   :  { %v1179_v25 = vpop.f32.mrb[36].mxu1 }
 0x576   :  { %v1180_v26 = vadd.f32 %v1350_v24, %v1179_v25  ;;  %v1510_v27 = vpop.f32.mrb[37].mxu1 }
 0x577   :  { %v1182_v28 = vpop.f32.mrb[38].mxu1 }
 0x578   :  { %v1185_v29 = vsel %vm1017_vm7, %v1180_v26, 0.0  ;;  %v1511_v30 = vpop.f32.mrb[39].mxu1 }
 0x579   :  { %v1186_v31 = vmul.f32 %v1185_v29, %v1185_v29 }
 0x57b   :  { %v1187_v32 = vsel %vm901_vm5, %v1186_v31, 0.0 }
 0x57c   :  { %1188 = vadd.xlane.f32.xlu1 %v1187_v32 }
 0x609   :  { %v1189_v38 = vpop.xlane.xlu1 %1188 }
 0x60a   :  { %1568 = vrsqrt.f32 %v1189_v38  ;;  %vm1192_vm10 = vcmp.eq.f32.partialorder %v1189_v38, inf  ;;  %v1195_v44 = vand.u32 2147483648, %v1189_v38  ;;  %vm1194_vm11 = vcmp.eq.f32.partialorder %v1189_v38, 0.0 }
 0x60b   :  { %1570 = vrcp.f32 %v1211_v42 }
 0x614   :  { %v1569_v43 = vpop.eup %1568 }
 0x615   :  { %v1191_v60 = vmul.f32 %v1569_v43, %v1189_v38  ;;  %v1571_v48 = vpop.eup %1570 }
 0x616   :  { %v1213_v37 = vmul.f32 %v1571_v48, %v1879_v50 }
 0x617   :  { %v1193_v45 = vsel %vm1192_vm10, %v1189_v38, %v1191_v60 }
 0x618   :  { %v1196_v46 = vsel %vm1194_vm11, %v1195_v44, %v1193_v45  ;;  %v1221_v52 = vrot.slane %v1213_v37, 6  ;;  %v1215_v53 = vrot.slane %v1213_v37, 2 }
 0x619   :  { %v1197_v47 = vmax.f32 %v1196_v46, 1e-12 }
 0x61b   :  { %1572 = vrcp.f32 %v1197_v47 }
 0x625   :  { %v1573_v49 = vpop.eup %1572 }
 0x626   :  { %v1199_v51 = vmul.f32 %v1573_v49, %v1185_v29 }
 0x628   :  { %v1223_v54 = vmul.f32 %v1221_v52, %v1199_v51  ;;  %v1217_v55 = vmul.f32 %v1215_v53, %v1199_v51 }
 0x62a   :  { %v1225_v56 = vsel %vm1224_vm12, %v1223_v54, 0.0  ;;  %v1218_v57 = vsel %vm832_vm4, %v1217_v55, 0.0 }
 0x62b   :  { %1226 = vadd.xlane.f32.xlu0 %v1225_v56  ;;  %1219 = vadd.xlane.f32.xlu1 %v1218_v57 }
 0x6b8   :  { %v1227_v58 = vpop.xlane.xlu0 %1226  ;;  %v1220_v59 = vpop.xlane.xlu1 %1219 }
 0x6b9   :  { %v1230_v61 = vmul.f32 2.0, %v1227_v58  ;;  %v1228_v62 = vmul.f32 2.0, %v1220_v59 }
 0x6bb   :  { %v1231_v63 = vsub.f32 2.0, %v1230_v61  ;;  %v1229_v1 = vsub.f32 2.0, %v1228_v62 }
 0x6bd   :  { %v1233_v0 = vrot.slane %v1231_v63, 2 }
 0x6bf   :  { %v1235_v50 = vadd.f32 %v1233_v0, %v1229_v1 }
 0x6c1   :  { %v1237_v35 = vsel %vm1236_vm13, %v1235_v50, 0.0 }
 0x6c2   :  { %1238 = vadd.xlane.f32.xlu1 %v1237_v35 }
 0x74f   :  { %v1239_v2 = vpop.xlane.xlu1 %1238 }
 0x750   :  { %v1240_v3 = vrot.slane %v1239_v2, 4 }
 0x752   :  { %v1241_v4 = vadd.f32 %v1240_v3, %v1239_v2 }
 0x754   :  { %v1242_v5 = vrot.slane %v1241_v4, 2 }
 0x756   :  { %v1243_v6 = vadd.f32 %v1242_v5, %v1241_v4 }
 0x758   :  { %v1244_v7 = vrot.slane %v1243_v6, 1 }
 0x75a   :  { %v1245_v8 = vadd.f32 %v1244_v7, %v1243_v6 }
 0x75c   :  { %1512 = vpush %v1245_v8 }
 0x78d   :  { %s1513_s2 = spop %1512 }
 0x78e   :  { %s1249_s8 = smul.f32 0.5, %s1513_s2 }
 0x790   :  { %1251 = sst [smem:[#allocation2]] %s1249_s8 }
 0x791   :  { %1583 = shalt.err (!%p1580_p2)
}
 0x792   :  { %s1589_s16 = smov [#allocation2]  }
 0x793   :  { %1259 = dma.smem_to_hbm %s1589_s16, 16, %s1926_s3, [#allocation3]  }
 0x794   :  { %1584 = dma.done.wait [#allocation3], 16  }
 0x795   :  { %1585 = vsyncadd [#allocation3], 4294967280 }
 0x796   :  { %1263 = sfence }
 0x797   :  { %1264 = vsyncpa [#allocation3], 1 }

</bundles_post_ra>
